<compile_context>
chip_gen: v5e
topology: v5e:2x2
jax: 0.10.0
libtpu: 0.0.40
codegen_flags: <defaults>
</compile_context>

<pallas_src>
import math
from functools import partial

import jax
import jax.numpy as jnp
from jax.experimental import pallas as pl
from jax.experimental.pallas import tpu as pltpu

_VMEM_LIMIT = 40 * 1024 * 1024  # < v7x 64 MiB physical, ample headroom on v5e/v6e (128 MiB)


# ----------------------------------------------------------------------------
# Small helpers (shared by the kernels and the pure-JAX reference)
# ----------------------------------------------------------------------------
def _round_up(x, m):
    return ((x + m - 1) // m) * m


def _pick_tile(dim, candidates):
    for t in candidates:
        if t <= dim and dim % t == 0:
            return t
    return dim  # full dim is always a legal block size


def _layer_norm(x, w, b, eps=1e-5):
    mu = jnp.mean(x, axis=-1, keepdims=True)
    var = jnp.mean((x - mu) ** 2, axis=-1, keepdims=True)
    return (x - mu) * jax.lax.rsqrt(var + eps) * w + b


def _new_gelu(x):
    c = math.sqrt(2.0 / math.pi)
    return 0.5 * x * (1.0 + jnp.tanh(c * (x + 0.044715 * x * x * x)))


def _split_heads(x, n_head):  # [B, T, C] -> [B, H, T, hd]
    B, T, C = x.shape
    hd = C // n_head
    return x.reshape(B, T, n_head, hd).transpose(0, 2, 1, 3)


def _merge_heads(y):  # [B, H, T, hd] -> [B, T, C]
    B, H, T, hd = y.shape
    return y.transpose(0, 2, 1, 3).reshape(B, T, H * hd)


# ----------------------------------------------------------------------------
# Kernel 1: fused [LN] + GEMM + bias [+ GELU] [+ residual]
# ----------------------------------------------------------------------------
def _fused_matmul_kernel(*refs, has_ln, has_res, gelu):
    idx = 0
    x_ref = refs[idx]; idx += 1
    w_ref = refs[idx]; idx += 1
    b_ref = refs[idx]; idx += 1
    if has_ln:
        lnw_ref = refs[idx]; lnb_ref = refs[idx + 1]; idx += 2
    if has_res:
        res_ref = refs[idx]; idx += 1
    out_ref = refs[idx]

    x = x_ref[...]
    if has_ln:
        x = _layer_norm(x.astype(jnp.float32), lnw_ref[...], lnb_ref[...])
    acc = jnp.dot(x.astype(jnp.bfloat16), w_ref[...],
                  preferred_element_type=jnp.float32) + b_ref[...]
    if gelu:
        acc = _new_gelu(acc)
    if has_res:
        acc = acc + res_ref[...]
    out_ref[...] = acc.astype(out_ref.dtype)


def pallas_fused_matmul(x, w, b, *, ln_w=None, ln_b=None, res=None, gelu=False,
                        out_dtype=jnp.float32):
    """out = [residual +] [gelu(] LN?(x) @ w + b [)] ; tiled over (N, M)."""
    M, K = x.shape
    N = w.shape[1]
    tm = _pick_tile(M, (512, 256, 128, 64, 32, 16, 8))
    tn = _pick_tile(N, (1024, 768, 512, 384, 256, 128))
    grid = (N // tn, M // tm)  # N outer / slowly varying -> each weight tile DMA'd once

    has_ln = ln_w is not None
    has_res = res is not None

    inputs = [x, w, b]
    in_specs = [pl.BlockSpec((tm, K), lambda j, i: (i, 0)),
                pl.BlockSpec((K, tn), lambda j, i: (0, j)),
                pl.BlockSpec((1, tn), lambda j, i: (0, j))]
    if has_ln:
        inputs += [ln_w, ln_b]
        in_specs += [pl.BlockSpec((1, K), lambda j, i: (0, 0)),
                     pl.BlockSpec((1, K), lambda j, i: (0, 0))]
    if has_res:
        inputs += [res]
        in_specs += [pl.BlockSpec((tm, tn), lambda j, i: (i, j))]

    return pl.pallas_call(
        partial(_fused_matmul_kernel, has_ln=has_ln, has_res=has_res, gelu=gelu),
        grid=grid,
        in_specs=in_specs,
        out_specs=pl.BlockSpec((tm, tn), lambda j, i: (i, j)),
        out_shape=jax.ShapeDtypeStruct((M, N), out_dtype),
        compiler_params=pltpu.CompilerParams(
            dimension_semantics=("parallel", "parallel"),
            vmem_limit_bytes=_VMEM_LIMIT),
    )(*inputs)


def ref_fused_matmul(x, w, b, *, ln_w=None, ln_b=None, res=None, gelu=False,
                     out_dtype=jnp.float32):
    xf = x.astype(jnp.float32)
    if ln_w is not None:
        xf = _layer_norm(xf, ln_w, ln_b)
    acc = jnp.dot(xf.astype(jnp.bfloat16), w, preferred_element_type=jnp.float32) + b
    if gelu:
        acc = _new_gelu(acc)
    if res is not None:
        acc = acc + res
    return acc.astype(out_dtype)


# ----------------------------------------------------------------------------
# Kernel 2: cached causal attention, grid over (batch, head); old/new KV kept separate
# ----------------------------------------------------------------------------
def _attn_kernel(q_ref, ko_ref, vo_ref, kn_ref, vn_ref, mo_ref, mn_ref, o_ref, *, scale):
    q = q_ref[...]                                             # [T, hd] bf16
    s_old = jax.lax.dot_general(q, ko_ref[...], (((1,), (1,)), ((), ())),
                                preferred_element_type=jnp.float32) * scale + mo_ref[...]
    s_new = jax.lax.dot_general(q, kn_ref[...], (((1,), (1,)), ((), ())),
                                preferred_element_type=jnp.float32) * scale + mn_ref[...]
    m = jnp.maximum(jnp.max(s_old, axis=-1, keepdims=True),
                    jnp.max(s_new, axis=-1, keepdims=True))
    e_old = jnp.exp(s_old - m)
    e_new = jnp.exp(s_new - m)
    denom = jnp.sum(e_old, axis=-1, keepdims=True) + jnp.sum(e_new, axis=-1, keepdims=True)
    inv = pl.reciprocal(denom, approx=True)                    # EUP slot, ~free next to MXU
    p_old = (e_old * inv).astype(jnp.bfloat16)
    p_new = (e_new * inv).astype(jnp.bfloat16)
    out = (jnp.dot(p_old, vo_ref[...], preferred_element_type=jnp.float32)
           + jnp.dot(p_new, vn_ref[...], preferred_element_type=jnp.float32))
    o_ref[...] = out.astype(o_ref.dtype)


def pallas_attention(q, k_old, v_old, k_new, v_new, mask_old, mask_new):
    B, H, T, hd = q.shape
    Tc = k_old.shape[2]
    assert Tc >= 1, "kv-cache path requires at least one cached position"
    scale = 1.0 / math.sqrt(hd)

    def bh_spec(t):
        return pl.BlockSpec((None, None, t, hd), lambda b, h: (b, h, 0, 0))

    return pl.pallas_call(
        partial(_attn_kernel, scale=scale),
        grid=(B, H),
        in_specs=[bh_spec(T), bh_spec(Tc), bh_spec(Tc), bh_spec(T), bh_spec(T),
                  pl.BlockSpec((T, Tc), lambda b, h: (0, 0)),     # fetched once (constant map)
                  pl.BlockSpec((T, T), lambda b, h: (0, 0))],
        out_specs=bh_spec(T),
        out_shape=jax.ShapeDtypeStruct((B, H, T, hd), jnp.bfloat16),
        compiler_params=pltpu.CompilerParams(
            dimension_semantics=("parallel", "parallel"),
            vmem_limit_bytes=_VMEM_LIMIT),
    )(q, k_old, v_old, k_new, v_new, mask_old, mask_new)


def ref_attention(q, k_old, v_old, k_new, v_new, mask_old, mask_new):
    scale = 1.0 / math.sqrt(q.shape[-1])
    s_old = jnp.einsum("bhqd,bhkd->bhqk", q, k_old,
                       preferred_element_type=jnp.float32) * scale + mask_old[None, None]
    s_new = jnp.einsum("bhqd,bhkd->bhqk", q, k_new,
                       preferred_element_type=jnp.float32) * scale + mask_new[None, None]
    m = jnp.maximum(s_old.max(-1, keepdims=True), s_new.max(-1, keepdims=True))
    e_old = jnp.exp(s_old - m)
    e_new = jnp.exp(s_new - m)
    denom = e_old.sum(-1, keepdims=True) + e_new.sum(-1, keepdims=True)
    p_old = (e_old / denom).astype(jnp.bfloat16)
    p_new = (e_new / denom).astype(jnp.bfloat16)
    out = (jnp.einsum("bhqk,bhkd->bhqd", p_old, v_old, preferred_element_type=jnp.float32)
           + jnp.einsum("bhqk,bhkd->bhqd", p_new, v_new, preferred_element_type=jnp.float32))
    return out.astype(jnp.bfloat16)


# ----------------------------------------------------------------------------
# Kernel 3: final LayerNorm + tied lm_head (vocab padded + tiled, Buffered(3) weights)
# ----------------------------------------------------------------------------
def _lnf_head_kernel(x_ref, lnw_ref, lnb_ref, wte_ref, out_ref):
    h = _layer_norm(x_ref[...], lnw_ref[...], lnb_ref[...]).astype(jnp.bfloat16)
    out_ref[...] = jax.lax.dot_general(h, wte_ref[...], (((1,), (1,)), ((), ())),
                                       preferred_element_type=jnp.float32)


def pallas_lnf_head(x_last, lnf_w, lnf_b, wte_pad_bf16, tile_v, vocab_size):
    B, C = x_last.shape
    Vp = wte_pad_bf16.shape[0]
    assert Vp % tile_v == 0

    try:  # deeper weight pipeline for the HBM-bound head; fall back if kwarg unsupported
        wte_spec = pl.BlockSpec((tile_v, C), lambda j: (j, 0), pipeline_mode=pl.Buffered(3))
    except TypeError:
        wte_spec = pl.BlockSpec((tile_v, C), lambda j: (j, 0))

    logits = pl.pallas_call(
        _lnf_head_kernel,
        grid=(Vp // tile_v,),
        in_specs=[pl.BlockSpec((B, C), lambda j: (0, 0)),
                  pl.BlockSpec(lnf_w.shape, lambda j: (0, 0)),
                  pl.BlockSpec(lnf_b.shape, lambda j: (0, 0)),
                  wte_spec],
        out_specs=pl.BlockSpec((B, tile_v), lambda j: (0, j)),
        out_shape=jax.ShapeDtypeStruct((B, Vp), jnp.float32),
        compiler_params=pltpu.CompilerParams(
            dimension_semantics=("parallel",),
            vmem_limit_bytes=_VMEM_LIMIT),
    )(x_last, lnf_w, lnf_b, wte_pad_bf16)
    return logits[:, :vocab_size]


# ----------------------------------------------------------------------------
# Transformer block (glue calling the kernels), mask, params, full forward
# ----------------------------------------------------------------------------
def gpt_block_forward(x, old_kv, mask, p, n_head, use_pallas=True):
    B, T, C = x.shape
    Tc = old_kv.shape[1]
    M = B * T
    mm = pallas_fused_matmul if use_pallas else ref_fused_matmul
    attn = pallas_attention if use_pallas else ref_attention

    xf = x.reshape(M, C)
    qkv = mm(xf, p["w_attn"], p["b_attn"], ln_w=p["ln1_w"], ln_b=p["ln1_b"],
             out_dtype=jnp.bfloat16).reshape(B, T, 3 * C)
    new_kv = qkv[:, :, C:]                                  # [B, T, 2C] bf16 new rows only

    q = _split_heads(qkv[:, :, :C], n_head)
    k_new = _split_heads(qkv[:, :, C:2 * C], n_head)
    v_new = _split_heads(qkv[:, :, 2 * C:], n_head)
    k_old = _split_heads(old_kv[:, :, :C], n_head)
    v_old = _split_heads(old_kv[:, :, C:], n_head)

    y = attn(q, k_old, v_old, k_new, v_new, mask[:, :Tc], mask[:, Tc:])
    y = _merge_heads(y).reshape(M, C)

    x1 = mm(y, p["w_proj"], p["b_proj"], res=xf, out_dtype=jnp.float32)
    ff = mm(x1, p["w_fc"], p["b_fc"], ln_w=p["ln2_w"], ln_b=p["ln2_b"], gelu=True,
            out_dtype=jnp.bfloat16)
    out = mm(ff, p["w_proj2"], p["b_proj2"], res=x1, out_dtype=jnp.float32)
    return out.reshape(B, T, C), new_kv


def make_qk_mask(seqlen, maxseqlen, currseqlen):
    # mirrors GPT.make_qk_mask (returned as [T, Tctx]; torch adds the (1,1,..) dims)
    base = jnp.tril(jnp.ones((seqlen, maxseqlen), jnp.float32), k=maxseqlen - seqlen)
    m = (1.0 - base) * -10000.0
    all_mask = jnp.full_like(m, -10000.0)
    row = jnp.arange(seqlen)[:, None] < max(0, seqlen - currseqlen)
    col = jnp.arange(maxseqlen)[None, :] < max(0, maxseqlen - currseqlen)
    m = jnp.where(row, all_mask, m)
    m = jnp.where(col, all_mask, m)
    return m


def init_params(key, cfg):
    V, C, L, BS = cfg["vocab_size"], cfg["n_embd"], cfg["n_layer"], cfg["block_size"]
    std = 0.02
    proj_std = 0.02 / math.sqrt(2 * L)  # c_proj special init
    keys = iter(jax.random.split(key, 2 + 4 * L))
    wte = jax.random.normal(next(keys), (V, C), jnp.float32) * std

    # tied lm_head weight: bf16 copy padded ONCE to a tileable vocab (handles V % 128 != 0)
    tile_v = 2048 if V >= 2048 else _round_up(V, 128)
    Vp = _round_up(V, tile_v)
    wte_head_pad = jnp.zeros((Vp, C), jnp.bfloat16).at[:V].set(wte.astype(jnp.bfloat16))

    params = {
        "wte": wte,                              # f32 master (embedding gather in glue)
        "wte_head_pad": wte_head_pad,
        "head_tile_v": tile_v,
        "wpe": jax.random.normal(next(keys), (BS, C), jnp.float32) * std,
        "lnf_w": jnp.ones((1, C), jnp.float32),
        "lnf_b": jnp.zeros((1, C), jnp.float32),
        "blocks": [],
    }
    for _ in range(L):
        params["blocks"].append({
            "ln1_w": jnp.ones((1, C), jnp.float32), "ln1_b": jnp.zeros((1, C), jnp.float32),
            "w_attn": (jax.random.normal(next(keys), (C, 3 * C), jnp.float32) * std
                       ).astype(jnp.bfloat16),
            "b_attn": jnp.zeros((1, 3 * C), jnp.float32),
            "w_proj": (jax.random.normal(next(keys), (C, C), jnp.float32) * proj_std
                       ).astype(jnp.bfloat16),
            "b_proj": jnp.zeros((1, C), jnp.float32),
            "ln2_w": jnp.ones((1, C), jnp.float32), "ln2_b": jnp.zeros((1, C), jnp.float32),
            "w_fc": (jax.random.normal(next(keys), (C, 4 * C), jnp.float32) * std
                     ).astype(jnp.bfloat16),
            "b_fc": jnp.zeros((1, 4 * C), jnp.float32),
            "w_proj2": (jax.random.normal(next(keys), (4 * C, C), jnp.float32) * proj_std
                        ).astype(jnp.bfloat16),
            "b_proj2": jnp.zeros((1, C), jnp.float32),
        })
    return params


def gpt_forward(input_ids, full_sequence_length, kv_cache, params, cfg, use_pallas=True):
    """Mirrors GPT.forward with kv_cache provided (return_kv_cache=True path)."""
    B, T = input_ids.shape
    L = len(params["blocks"])
    C = cfg["n_embd"]
    Tc = kv_cache.shape[2]
    context_length = cfg["context_length"]
    # The torch mask is [T, context_length] and attention scores are [T, Tc+T]; as in the
    # torch model this only lines up when the cache holds exactly context_length-T rows.
    assert Tc + T == context_length, "kv_cache length must equal context_length - input_length"

    pos_offset = T - full_sequence_length if full_sequence_length else 0
    pos = jnp.maximum(jnp.arange(T) - pos_offset, 0)
    tok_emb = params["wte"][input_ids]            # [B, T, C]  (embedding gather = glue)
    pos_emb = params["wpe"][pos][None, :, :]      # [1, T, C]
    x = tok_emb + pos_emb                         # dropout=0.0 -> identity
    mask = make_qk_mask(T, context_length, full_sequence_length)

    new_rows = []                                 # per-layer [B, T, 2C] bf16 new cache rows
    for l, p in enumerate(params["blocks"]):
        x, nk = gpt_block_forward(x, kv_cache[l], mask, p, cfg["n_head"],
                                  use_pallas=use_pallas)
        new_rows.append(nk)

    x_last = x[:, -1, :]                          # [B, C] only last token goes to the head
    if use_pallas:
        logits = pallas_lnf_head(x_last, params["lnf_w"], params["lnf_b"],
                                 params["wte_head_pad"], params["head_tile_v"],
                                 cfg["vocab_size"])[:, None, :]
    else:
        h = _layer_norm(x_last, params["lnf_w"], params["lnf_b"]).astype(jnp.bfloat16)
        logits = jax.lax.dot_general(h, params["wte_head_pad"], (((1,), (1,)), ((), ())),
                                     preferred_element_type=jnp.float32
                                     )[:, :cfg["vocab_size"]][:, None, :]

    # Cache views assembled from (old cache, new rows) — equivalent to torch's
    # full = stack(cat([old, new])) followed by slicing, without materializing `full`.
    new_stack = jnp.stack(new_rows)               # [L, B, T, 2C] bf16
    if T <= Tc:
        prompt_kv_cache = jnp.concatenate([kv_cache[:, :, T:, :], new_stack], axis=2)
    else:
        prompt_kv_cache = new_stack[:, :, T - Tc:, :]
    if T > 1:
        generation_kv_cache = jnp.concatenate(
            [kv_cache[:, :, 1:, :], new_stack[:, :, :1, :]], axis=2)
    else:
        # TODO(synk): torch's full[:, :, 1:-(T-1), :] is an empty slice for T == 1; mirrored.
        generation_kv_cache = jnp.zeros((L, B, 0, 2 * C), kv_cache.dtype)
    return logits, prompt_kv_cache, generation_kv_cache
    # TODO(synk): torch's output_types() casts outputs to float16; logits kept f32,
    #             kv caches kept bf16 (TPU-native half precision).


# ----------------------------------------------------------------------------
if __name__ == "__main__":
    cfg = dict(vocab_size=128, block_size=64, n_layer=2, n_head=2, n_embd=32,
               context_length=16)
    B, T = 2, 8
    Tc = cfg["context_length"] - T                 # cached positions per layer
    full_sequence_length = 12                      # total tokens so far (incl. cache)

    key = jax.random.PRNGKey(0)
    k_param, k_ids, k_cache = jax.random.split(key, 3)
    params = init_params(k_param, cfg)
    input_ids = jax.random.randint(k_ids, (B, T), 0, cfg["vocab_size"], dtype=jnp.int32)
    kv_cache = (jax.random.normal(k_cache, (cfg["n_layer"], B, Tc, 2 * cfg["n_embd"]),
                                  jnp.float32) * 0.02).astype(jnp.bfloat16)

    logits, prompt_kv, gen_kv = gpt_forward(input_ids, full_sequence_length, kv_cache,
                                            params, cfg, use_pallas=True)
    jax.block_until_ready((logits, prompt_kv, gen_kv))

    # shape checks + pure-JAX reference of the identical math
    assert logits.shape == (B, 1, cfg["vocab_size"])
    assert prompt_kv.shape == (cfg["n_layer"], B, Tc, 2 * cfg["n_embd"])
    assert gen_kv.shape == (cfg["n_layer"], B, Tc, 2 * cfg["n_embd"])

    ref = gpt_forward(input_ids, full_sequence_length, kv_cache, params, cfg,
                      use_pallas=False)
    for got, want in zip((logits, prompt_kv, gen_kv), ref):
        g = got.astype(jnp.float32)
        w = want.astype(jnp.float32)
        assert jnp.allclose(g, w, rtol=2e-2, atol=2e-2), float(jnp.max(jnp.abs(g - w)))

    print("KERNEL_OK")
</pallas_src>

<mosaic_0001>
module attributes {stable_mosaic.version = 11 : i64} {
  func.func @_fused_matmul_kernel(%arg0: i32, %arg1: i32, %arg2: memref<16x32xf32, #tpu.memory_space<vmem>>, %arg3: memref<32x96xbf16, #tpu.memory_space<vmem>>, %arg4: memref<1x96xf32, #tpu.memory_space<vmem>>, %arg5: memref<1x32xf32, #tpu.memory_space<vmem>>, %arg6: memref<1x32xf32, #tpu.memory_space<vmem>>, %arg7: memref<16x96xbf16, #tpu.memory_space<vmem>>) attributes {dimension_semantics = [#tpu.dimension_semantics<parallel>, #tpu.dimension_semantics<parallel>], iteration_bounds = array<i64: 1, 1>, scalar_prefetch = 0 : i64, scratch_operands = 0 : i64, tpu.core_type = #tpu.core_type<tc>, window_params = [{transform_indices = @transform_0, window_bounds = array<i64: 16, 32>}, {transform_indices = @transform_1, window_bounds = array<i64: 32, 96>}, {transform_indices = @transform_2, window_bounds = array<i64: 1, 96>}, {pipeline_mode = #tpu.pipeline_mode<synchronous>, transform_indices = @transform_3, window_bounds = array<i64: 1, 32>}, {pipeline_mode = #tpu.pipeline_mode<synchronous>, transform_indices = @transform_4, window_bounds = array<i64: 1, 32>}, {transform_indices = @transform_5, window_bounds = array<i64: 16, 96>}]} {
    %c0 = arith.constant 0 : index
    %c0_0 = arith.constant 0 : index
    %0 = vector.load %arg2[%c0, %c0_0] : memref<16x32xf32, #tpu.memory_space<vmem>>, vector<16x32xf32>
    %c0_1 = arith.constant 0 : index
    %c0_2 = arith.constant 0 : index
    %1 = vector.load %arg5[%c0_1, %c0_2] : memref<1x32xf32, #tpu.memory_space<vmem>>, vector<1x32xf32>
    %c0_3 = arith.constant 0 : index
    %c0_4 = arith.constant 0 : index
    %2 = vector.load %arg6[%c0_3, %c0_4] : memref<1x32xf32, #tpu.memory_space<vmem>>, vector<1x32xf32>
    %cst = arith.constant dense<0.000000e+00> : vector<16xf32>
    %3 = vector.multi_reduction <add>, %0, %cst [1] : vector<16x32xf32> to vector<16xf32>
    %4 = vector.shape_cast %3 : vector<16xf32> to vector<16x1xf32>
    %cst_5 = arith.constant 3.200000e+01 : f32
    %5 = vector.broadcast %cst_5 : f32 to vector<16x1xf32>
    %6 = arith.divf %4, %5 : vector<16x1xf32>
    %7 = vector.broadcast %6 : vector<16x1xf32> to vector<16x32xf32>
    %8 = arith.subf %0, %7 : vector<16x32xf32>
    %9 = arith.mulf %8, %8 : vector<16x32xf32>
    %cst_6 = arith.constant dense<0.000000e+00> : vector<16xf32>
    %10 = vector.multi_reduction <add>, %9, %cst_6 [1] : vector<16x32xf32> to vector<16xf32>
    %11 = vector.shape_cast %10 : vector<16xf32> to vector<16x1xf32>
    %cst_7 = arith.constant 3.200000e+01 : f32
    %12 = vector.broadcast %cst_7 : f32 to vector<16x1xf32>
    %13 = arith.divf %11, %12 : vector<16x1xf32>
    %14 = vector.broadcast %6 : vector<16x1xf32> to vector<16x32xf32>
    %15 = arith.subf %0, %14 : vector<16x32xf32>
    %cst_8 = arith.constant 9.99999974E-6 : f32
    %16 = vector.broadcast %cst_8 : f32 to vector<16x1xf32>
    %17 = arith.addf %13, %16 : vector<16x1xf32>
    %18 = math.rsqrt %17 : vector<16x1xf32>
    %19 = vector.broadcast %18 : vector<16x1xf32> to vector<16x32xf32>
    %20 = arith.mulf %15, %19 : vector<16x32xf32>
    %21 = vector.broadcast %1 : vector<1x32xf32> to vector<16x32xf32>
    %22 = arith.mulf %20, %21 : vector<16x32xf32>
    %23 = vector.broadcast %2 : vector<1x32xf32> to vector<16x32xf32>
    %24 = arith.addf %22, %23 : vector<16x32xf32>
    %25 = arith.truncf %24 : vector<16x32xf32> to vector<16x32xbf16>
    %c0_9 = arith.constant 0 : index
    %c0_10 = arith.constant 0 : index
    %26 = vector.load %arg3[%c0_9, %c0_10] : memref<32x96xbf16, #tpu.memory_space<vmem>>, vector<32x96xbf16>
    %cst_11 = arith.constant dense<0.000000e+00> : vector<16x96xf32>
    %27 = tpu.matmul %25, %26, %cst_11 {dimension_numbers = #tpu.dot_dimension_numbers<[1], [0], [0], [1], [0, 0, 1, 1], [], []>} : vector<16x32xbf16>, vector<32x96xbf16>, vector<16x96xf32> -> vector<16x96xf32>
    %c0_12 = arith.constant 0 : index
    %c0_13 = arith.constant 0 : index
    %28 = vector.load %arg4[%c0_12, %c0_13] : memref<1x96xf32, #tpu.memory_space<vmem>>, vector<1x96xf32>
    %29 = vector.broadcast %28 : vector<1x96xf32> to vector<16x96xf32>
    %30 = arith.addf %27, %29 : vector<16x96xf32>
    %31 = arith.truncf %30 : vector<16x96xf32> to vector<16x96xbf16>
    %c0_14 = arith.constant 0 : index
    %c0_15 = arith.constant 0 : index
    %32 = vector.load %arg7[%c0_14, %c0_15] : memref<16x96xbf16, #tpu.memory_space<vmem>>, vector<16x96xbf16>
    tpu.vector_store %arg7[%c0_14, %c0_15], %31 {strides = array<i32>} : memref<16x96xbf16, #tpu.memory_space<vmem>>, vector<16x96xbf16>,
    return
  }
  func.func @transform_0(%arg0: i32, %arg1: i32) -> (i32, i32) {
    %c0_i32 = arith.constant 0 : i32
    %c0_i32_0 = arith.constant 0 : i32
    return %arg1, %c0_i32 : i32, i32
  }
  func.func @transform_1(%arg0: i32, %arg1: i32) -> (i32, i32) {
    %c0_i32 = arith.constant 0 : i32
    %c0_i32_0 = arith.constant 0 : i32
    return %c0_i32, %arg0 : i32, i32
  }
  func.func @transform_2(%arg0: i32, %arg1: i32) -> (i32, i32) {
    %c0_i32 = arith.constant 0 : i32
    %c0_i32_0 = arith.constant 0 : i32
    return %c0_i32, %arg0 : i32, i32
  }
  func.func @transform_3(%arg0: i32, %arg1: i32) -> (i32, i32) {
    %c0_i32 = arith.constant 0 : i32
    %c0_i32_0 = arith.constant 0 : i32
    %c0_i32_1 = arith.constant 0 : i32
    return %c0_i32, %c0_i32_0 : i32, i32
  }
  func.func @transform_4(%arg0: i32, %arg1: i32) -> (i32, i32) {
    %c0_i32 = arith.constant 0 : i32
    %c0_i32_0 = arith.constant 0 : i32
    %c0_i32_1 = arith.constant 0 : i32
    return %c0_i32, %c0_i32_0 : i32, i32
  }
  func.func @transform_5(%arg0: i32, %arg1: i32) -> (i32, i32) {
    %c0_i32 = arith.constant 0 : i32
    return %arg1, %arg0 : i32, i32
  }
}

</mosaic_0001>

<bundles_post_ra>
// kernel: tpu_custom_call.1
= control target key start
LH: loop header
LB: loop body
LE: loop exit
PB: predicated region body
PF: predicated region fallthrough
CT: control target
= control target key end

     0   :  { %10 = vsyncpa [#allocation3], 0  ;;  %s356_s0 = inlined_call_operand.hbm [shape: f32[16,32], index: 0, kind: input, shape index: {}]   ;;  %s357_s1 = inlined_call_operand.hbm [shape: bf16[32,96], index: 1, kind: input, shape index: {}]   ;;  %s358_s2 = inlined_call_operand.vmem [shape: f32[1,96], index: 2, kind: input, shape index: {}]   ;;  %s359_s3 = inlined_call_operand.vmem [shape: f32[1,32], index: 3, kind: input, shape index: {}]   ;;  %s360_s4 = inlined_call_operand.vmem [shape: f32[1,32], index: 4, kind: input, shape index: {}]   ;;  %s361_s5 = inlined_call_operand.hbm [shape: bf16[16,96], index: 5, kind: output, shape index: {}]  }
   0x1   :  { %11 = vsyncpa [#allocation6], 0 }
   0x2   :  { %12 = vsyncpa [#allocation4], 0  ;;  %s17_s20 = sshll.u32 %s356_s0, 4  ;;  %s289_s21 = smov [#allocation2]   ;;  %s18_s20 = int_to_ptr.hbm [resolvable:$true] %s17_s20 }
   0x3   :  { %s19_s22 = sshll.u32 %s289_s21, 4  ;;  %s30_s25 = sshll.u32 %s357_s1, 4  ;;  %s20_s22 = int_to_ptr.vmem [resolvable:$true] %s19_s22  ;;  %s31_s25 = int_to_ptr.hbm [resolvable:$true] %s30_s25 }
   0x4   :  { %s290_s26 = smov 128   ;;  %s291_s27 = smov 8  }
   0x5   :  { %25 = dma.hbm_to_vmem [thread:$0]  %s18_s20, 256, %s20_s22, [#allocation3], %s290_s26, %s290_s26, %s291_s27  }
   0x6   :  { %s292_s28 = smov [#allocation5]   ;;  %s293_s30 = smov 64  }
   0x7   :  { %s32_s29 = sshll.u32 %s292_s28, 4  ;;  %s294_s6 = smov 4   ;;  %s33_s29 = int_to_ptr.vmem [resolvable:$true] %s32_s29 }
   0x8   :  { %38 = dma.hbm_to_vmem [thread:$0]  %s31_s25, 256, %s33_s29, [#allocation6], %s293_s30, %s293_s30, %s294_s6  }
   0x9   :  { %283 = dma.done.wait [#allocation3], 256  }
   0xa   :  { %284 = vsyncadd [#allocation3], 4294967040 }
   0xb   :  { %285 = dma.done.wait [#allocation6], 256  }
   0xc   :  { %286 = vsyncadd [#allocation6], 4294967040  ;;  %vm58_vm0 = vcmask 261120   ;;  %v54_v0 = vld [vmem:[#allocation2] sm:$0xff]  ;;  %v55_v2 = vld [vmem:[#allocation2 + $0x8] sm:$0xff]  ;;  %v295_v4 = vmov 32.0  }
   0xd   :  { %v59_v1 = vsel %vm58_vm0, %v54_v0, 0.0  ;;  %v62_v3 = vsel %vm58_vm0, %v55_v2, 0.0  ;;  %205 = vrcp.f32 %v295_v4  ;;  %v193_v21 = vld [vmem:[#allocation5 + $0x8] sm:$0xff]  ;;  %v192_v23 = vld [vmem:[#allocation5] sm:$0xff]  ;;  %v202_v42 = vld [vmem:[%s359_s3] ss:$0 sm:$0xff] }
   0xe   :  { %60 = vadd.xlane.f32.xlu0 %v59_v1  ;;  %150 = vmatpush.bf16.msra.mxu0 %v193_v21  ;;  %v203_v47 = vld [vmem:[%s360_s4] ss:$0 sm:$0xff]  ;;  %vm160_vm8 = vcmask 781312   ;;  %s296_s3 = smov [#allocation7]   ;;  %s169_s13 = sshll.u32 %s361_s5, 4  ;;  %s170_s13 = int_to_ptr.hbm [resolvable:$true] %s169_s13 }
   0xf   :  { %v204_v52 = vld [vmem:[%s358_s2] ss:$0 sm:$0xff]  ;;  %s167_s11 = sshll.u32 %s296_s3, 4  ;;  %s168_s11 = int_to_ptr.vmem [resolvable:$true] %s167_s11 }
  0x12   :  { %151 = vmatpush.bf16.msra.mxu0 %v192_v23 }
  0x13   :  { %v206_v5 = vpop.eup %205 }
  0x14   :  { %v66_v6 = vmul.f32 32.0, %v206_v5  ;;  %vm70_vm1 = vweird.f32 %v206_v5 }
  0x16   :  { %63 = vadd.xlane.f32.xlu0 %v62_v3  ;;  %v67_v7 = vsub.f32 1.0, %v66_v6 }
  0x18   :  { %v68_v8 = vmul.f32 %v206_v5, %v67_v7 }
  0x1a   :  { %v69_v9 = vadd.f32 %v206_v5, %v68_v8 }
  0x1c   :  { %v71_v10 = vsel %vm70_vm1, %v206_v5, %v69_v9 }
  0x81   :  { %v61_v11 = vpop.xlane.xlu0 %60 }
  0x82   :  { %v72_v12 = vmul.f32 %v71_v10, %v61_v11 }
  0x84   :  { %v74_v13 = vsub.f32 %v54_v0, %v72_v12 }
  0x86   :  { %v76_v14 = vmul.f32 %v74_v13, %v74_v13 }
  0x88   :  { %v78_v15 = vsel %vm58_vm0, %v76_v14, 0.0 }
  0x89   :  { %79 = vadd.xlane.f32.xlu1 %v78_v15  ;;  %v64_v16 = vpop.xlane.xlu0 %63 }
  0x8a   :  { %v73_v17 = vmul.f32 %v71_v10, %v64_v16 }
  0x8c   :  { %v75_v18 = vsub.f32 %v55_v2, %v73_v17 }
  0x8e   :  { %v77_v19 = vmul.f32 %v75_v18, %v75_v18 }
  0x90   :  { %v81_v20 = vsel %vm58_vm0, %v77_v19, 0.0 }
  0x91   :  { %82 = vadd.xlane.f32.xlu1 %v81_v20 }
  0xfc   :  { %v80_v22 = vpop.xlane.xlu1 %79 }
  0xfd   :  { %v84_v24 = vmul.f32 %v80_v22, %v71_v10 }
  0xff   :  { %v86_v25 = vadd.f32 1e-05, %v84_v24 }
 0x101   :  { %207 = vrsqrt.f32 %v86_v25  ;;  %vm94_vm3 = vweird.f32 %v86_v25 }
 0x104   :  { %v83_v26 = vpop.xlane.xlu1 %82 }
 0x105   :  { %v85_v27 = vmul.f32 %v83_v26, %v71_v10 }
 0x107   :  { %v208_v28 = vpop.eup %207  ;;  %v87_v29 = vadd.f32 1e-05, %v85_v27 }
 0x108   :  { %v89_v30 = vmul.f32 %v208_v28, %v86_v25  ;;  %vm95_vm2 = vweird.f32 %v208_v28 }
 0x109   :  { %209 = vrsqrt.f32 %v87_v29  ;;  %vm96_vm4 = vmor %vm94_vm3, %vm95_vm2  ;;  %vm104_vm6 = vweird.f32 %v87_v29 }
 0x10a   :  { %v90_v31 = vmul.f32 %v208_v28, %v89_v30 }
 0x10c   :  { %v91_v32 = vmul.f32 0.5, %v90_v31 }
 0x10e   :  { %v92_v33 = vsub.f32 1.5, %v91_v32 }
 0x10f   :  { %v210_v34 = vpop.eup %209 }
 0x110   :  { %v93_v35 = vmul.f32 %v208_v28, %v92_v33  ;;  %v99_v36 = vmul.f32 %v210_v34, %v87_v29  ;;  %vm105_vm5 = vweird.f32 %v210_v34 }
 0x111   :  { %vm106_vm7 = vmor %vm104_vm6, %vm105_vm5 }
 0x112   :  { %v100_v37 = vmul.f32 %v210_v34, %v99_v36  ;;  %v97_v38 = vsel %vm96_vm4, %v208_v28, %v93_v35 }
 0x113   :  { %v108_v41 = vmul.f32 %v97_v38, %v74_v13 }
 0x114   :  { %v101_v39 = vmul.f32 0.5, %v100_v37 }
 0x115   :  { %v113_v46 = vmul.f32 %v202_v42, %v108_v41 }
 0x116   :  { %v102_v40 = vsub.f32 1.5, %v101_v39 }
 0x117   :  { %v118_v49 = vadd.f32 %v203_v47, %v113_v46 }
 0x118   :  { %v103_v43 = vmul.f32 %v210_v34, %v102_v40 }
 0x11a   :  { %v107_v44 = vsel %vm106_vm7, %v210_v34, %v103_v43 }
 0x11b   :  { %v109_v45 = vmul.f32 %v107_v44, %v75_v18 }
 0x11d   :  { %v114_v48 = vmul.f32 %v202_v42, %v109_v45 }
 0x11f   :  { %v119_v50 = vadd.f32 %v203_v47, %v114_v48 }
 0x121   :  { %v120_v51 = vpack.c.bf16 %v119_v50, %v118_v49 }
 0x123   :  { %191 = vmatmul.msk.bf16.vlgmr.msra.gmra.mxu0 %vm58_vm0, %v120_v51 }
 0x1a0   :  { %v153_v53 = vpop.f32.mrf.mxu0 }
 0x1a1   :  { %v154_v54 = vadd.f32 %v204_v52, %v153_v53 }
 0x1a3   :  { %v158_v55 = vpack.c.bf16 %v154_v54, %v154_v54 }
 0x1a5   :  { %161 = vst.msk [vmem:[#allocation7] sm:$0xf] %vm160_vm8, %v158_v55 }
 0x1a8   :  { %v155_v56 = vpop.f32.mrf.mxu0 }
 0x1a9   :  { %v156_v57 = vadd.f32 %v204_v52, %v155_v56 }
 0x1ab   :  { %v159_v58 = vpack.c.bf16 %v156_v57, %v156_v57 }
 0x1ad   :  { %162 = vst.msk [vmem:[#allocation7 + $0x4] sm:$0xf] %vm160_vm8, %v159_v58 }
 0x1ae   :  { %175 = dma.vmem_to_hbm [thread:$0]  %s168_s11, 128, %s170_s13, [#allocation4], %s293_s30, %s293_s30, %s294_s6  }
 0x1af   :  { %287 = dma.done.wait [#allocation4], 128  }
 0x1b0   :  { %288 = vsyncadd [#allocation4], 4294967168 }
 0x1b1   :  { %180 = vsyncpa [#allocation3], 1 }
 0x1b2   :  { %181 = vsyncpa [#allocation6], 1 }
 0x1b3   :  { %182 = vsyncpa [#allocation4], 1 }

</bundles_post_ra>
